<compile_context>
chip_gen: v5e
topology: v5e:2x2
jax: 0.10.0
libtpu: 0.0.40
codegen_flags: <defaults>
</compile_context>

<pallas_src>
import functools

import jax
import jax.numpy as jnp
from jax import lax
from jax.experimental import pallas as pl
from jax.experimental.pallas import tpu as pltpu


def _round_up(x, m):
    return ((x + m - 1) // m) * m


def _sublane_multiple(dtype):
    itemsize = jnp.dtype(dtype).itemsize
    return {4: 8, 2: 16, 1: 32}.get(itemsize, 8)


def _vmem_capacity_bytes():
    """Physical VMEM per TensorCore; conservative v7x-sized fallback (64 MiB)."""
    try:
        info = pltpu.get_tpu_info()
        cap = int(getattr(info, "vmem_capacity_bytes", 0))
        if cap > 0:
            return cap
    except Exception:
        pass
    return 64 << 20


def _block_vmem_bytes(rows, d, in_itemsize, out_itemsize, w_itemsize):
    """Working set of one grid step. Single source of truth for both the tile
    selector and vmem_limit_bytes: double-buffered in/out blocks, the fp32
    upcast temporaries live across the variance reduce, and the weight block."""
    elems = rows * d
    return (2 * elems * in_itemsize        # input block, double buffered
            + 2 * elems * out_itemsize     # output block, double buffered
            + 3 * elems * 4                # fp32 x / x*x / x_norm temporaries
            + 2 * d * w_itemsize)          # weight block


def _select_row_tile(n_rows, d, x_dtype, out_dtype, w_dtype, budget_bytes):
    """Largest sublane-aligned row tile whose working set fits the budget,
    while keeping >= 4 grid steps (2 per v7x TensorCore) when there is work."""
    sub = _sublane_multiple(x_dtype)
    in_it = jnp.dtype(x_dtype).itemsize
    out_it = jnp.dtype(out_dtype).itemsize
    w_it = jnp.dtype(w_dtype).itemsize
    per_row = d * (2 * in_it + 2 * out_it + 3 * 4)
    usable = max(int(budget_bytes) - 2 * d * w_it, per_row)
    tile = max(sub, (usable // per_row) // sub * sub)
    tile = min(tile, _round_up(n_rows, sub))
    min_steps = 4
    if n_rows >= 2 * min_steps * sub and pl.cdiv(n_rows, tile) < min_steps:
        tile = max(sub, ((n_rows // min_steps) // sub) * sub)
    return tile


def _rmsnorm_kernel(x_ref, w_ref, o_ref, *, eps, inv_d):
    # T5/Switch RMSNorm: variance accumulated in fp32 over the feature dim.
    x = x_ref[...].astype(jnp.float32)
    var = jnp.sum(x * x, axis=-1, keepdims=True) * inv_d
    x_norm = x * lax.rsqrt(var + eps)
    w = w_ref[...]
    if jnp.issubdtype(w.dtype, jnp.floating) and jnp.dtype(w.dtype).itemsize == 2:
        # Match HF SwitchTransformersLayerNorm: cast to the half-precision
        # weight dtype *before* the elementwise scale.
        x_norm = x_norm.astype(w.dtype)
    o_ref[...] = (w * x_norm).astype(o_ref.dtype)


def switch_final_layer_norm(hidden_states, weight, *, eps=1e-6, row_tile=None):
    """SwitchFinalLayerNorm forward. hidden_states: [B, S, d_model]; weight: [d_model].
    The module's forward only applies the RMSNorm (dropout is not applied)."""
    b, s, d = hidden_states.shape
    n_rows = b * s
    x2d = hidden_states.reshape(n_rows, d)
    w2d = weight.reshape(1, d)

    # HF output dtype semantics: states are promoted to fp32 by the rsqrt
    # multiply; if the weight is half precision they are cast to it before the
    # scale, so the result is weight.dtype. Otherwise the result stays fp32.
    w_dtype = jnp.dtype(weight.dtype)
    if jnp.issubdtype(w_dtype, jnp.floating) and w_dtype.itemsize == 2:
        out_dtype = w_dtype
    else:
        out_dtype = jnp.dtype(jnp.float32)

    in_it = jnp.dtype(x2d.dtype).itemsize
    out_it = out_dtype.itemsize
    w_it = w_dtype.itemsize

    # Generation-aware block budget: ~40 MiB on v7x (64 MiB VMEM), ~48 MiB on
    # v5e/v6e (128 MiB VMEM).
    vmem_cap = _vmem_capacity_bytes()
    budget = max(8 << 20, min(vmem_cap - (24 << 20), 48 << 20))

    if row_tile is None:
        row_tile = _select_row_tile(n_rows, d, x2d.dtype, out_dtype, w_dtype, budget)

    block_bytes = _block_vmem_bytes(row_tile, d, in_it, out_it, w_it)
    vmem_limit = int(
        min(max(block_bytes + (8 << 20), 16 << 20),
            max(vmem_cap - (16 << 20), 16 << 20))
    )

    grid = (pl.cdiv(n_rows, row_tile),)  # ragged edge blocks handled by Pallas

    kernel = functools.partial(_rmsnorm_kernel, eps=eps, inv_d=1.0 / d)

    cost = pl.CostEstimate(
        flops=6 * n_rows * d,
        transcendentals=n_rows,
        bytes_accessed=n_rows * d * (in_it + out_it) + d * w_it,
    )

    out2d = pl.pallas_call(
        kernel,
        out_shape=jax.ShapeDtypeStruct((n_rows, d), out_dtype),
        grid_spec=pltpu.PrefetchScalarGridSpec(
            num_scalar_prefetch=0,
            grid=grid,
            in_specs=[
                pl.BlockSpec((row_tile, d), lambda i: (i, 0)),  # x rows
                pl.BlockSpec((1, d), lambda i: (0, 0)),          # weight (broadcast)
            ],
            out_specs=pl.BlockSpec((row_tile, d), lambda i: (i, 0)),
        ),
        compiler_params=pltpu.CompilerParams(
            dimension_semantics=("parallel",),   # v7x megacore splits the row axis
            vmem_limit_bytes=vmem_limit,
        ),
        cost_estimate=cost,
    )(x2d, w2d)

    return out2d.reshape(b, s, d)


def _reference(hidden_states, weight, eps=1e-6):
    x = hidden_states.astype(jnp.float32)
    var = jnp.mean(x * x, axis=-1, keepdims=True)
    x_norm = x * jax.lax.rsqrt(var + eps)
    if jnp.issubdtype(weight.dtype, jnp.floating) and jnp.dtype(weight.dtype).itemsize == 2:
        x_norm = x_norm.astype(weight.dtype)
    return weight * x_norm


if __name__ == "__main__":
    key = jax.random.PRNGKey(0)
    k1, k2, k3, k4 = jax.random.split(key, 4)
    eps = 1e-6

    # Case 1: small fp32 shapes consistent with the module (d_model=32
    # exercises the "last block dim == full array dim" path, no padding).
    b, s, d = 2, 8, 32
    x = jax.random.normal(k1, (b, s, d), dtype=jnp.float32)
    w = 1.0 + 0.1 * jax.random.normal(k2, (d,), dtype=jnp.float32)
    out = jax.block_until_ready(switch_final_layer_norm(x, w, eps=eps))
    ref = _reference(x, w, eps=eps)
    assert out.shape == x.shape
    assert out.dtype == ref.dtype
    assert jnp.allclose(out, ref, atol=1e-5, rtol=1e-5), "fp32 mismatch"

    # Case 2: bf16 with a lane-dense d_model and a row count that does not
    # divide the row tile (exercises the ragged/cdiv grid path + half-precision
    # weight cast semantics / half output dtype).
    b, s, d = 2, 9, 256
    x = jax.random.normal(k3, (b, s, d), dtype=jnp.float32).astype(jnp.bfloat16)
    w = (1.0 + 0.1 * jax.random.normal(k4, (d,), dtype=jnp.float32)).astype(jnp.bfloat16)
    out = jax.block_until_ready(switch_final_layer_norm(x, w, eps=eps))
    ref = _reference(x, w, eps=eps)
    assert out.shape == x.shape
    assert out.dtype == jnp.bfloat16
    assert jnp.allclose(out.astype(jnp.float32), ref.astype(jnp.float32),
                        atol=2e-2, rtol=2e-2), "bf16 mismatch"

    print("KERNEL_OK")
</pallas_src>

<mosaic_0001>
module attributes {stable_mosaic.version = 11 : i64} {
  func.func @_rmsnorm_kernel(%arg0: i32, %arg1: memref<16x32xf32, #tpu.memory_space<vmem>>, %arg2: memref<1x32xf32, #tpu.memory_space<vmem>>, %arg3: memref<16x32xf32, #tpu.memory_space<vmem>>) attributes {dimension_semantics = [#tpu.dimension_semantics<parallel>], iteration_bounds = array<i64: 1>, scalar_prefetch = 0 : i64, scratch_operands = 0 : i64, tpu.core_type = #tpu.core_type<tc>, window_params = [{transform_indices = @transform_0, window_bounds = array<i64: 16, 32>}, {pipeline_mode = #tpu.pipeline_mode<synchronous>, transform_indices = @transform_1, window_bounds = array<i64: 1, 32>}, {transform_indices = @transform_2, window_bounds = array<i64: 16, 32>}]} {
    %c0 = arith.constant 0 : index
    %c0_0 = arith.constant 0 : index
    %0 = vector.load %arg1[%c0, %c0_0] : memref<16x32xf32, #tpu.memory_space<vmem>>, vector<16x32xf32>
    %1 = arith.mulf %0, %0 : vector<16x32xf32>
    %cst = arith.constant dense<0.000000e+00> : vector<16xf32>
    %2 = vector.multi_reduction <add>, %1, %cst [1] : vector<16x32xf32> to vector<16xf32>
    %3 = vector.shape_cast %2 : vector<16xf32> to vector<16x1xf32>
    %cst_1 = arith.constant 3.125000e-02 : f32
    %4 = vector.broadcast %cst_1 : f32 to vector<16x1xf32>
    %5 = arith.mulf %3, %4 : vector<16x1xf32>
    %cst_2 = arith.constant 9.99999997E-7 : f32
    %6 = vector.broadcast %cst_2 : f32 to vector<16x1xf32>
    %7 = arith.addf %5, %6 : vector<16x1xf32>
    %8 = math.rsqrt %7 : vector<16x1xf32>
    %9 = vector.broadcast %8 : vector<16x1xf32> to vector<16x32xf32>
    %10 = arith.mulf %0, %9 : vector<16x32xf32>
    %c0_3 = arith.constant 0 : index
    %c0_4 = arith.constant 0 : index
    %11 = vector.load %arg2[%c0_3, %c0_4] : memref<1x32xf32, #tpu.memory_space<vmem>>, vector<1x32xf32>
    %12 = vector.broadcast %11 : vector<1x32xf32> to vector<16x32xf32>
    %13 = arith.mulf %12, %10 : vector<16x32xf32>
    %c0_5 = arith.constant 0 : index
    %c0_6 = arith.constant 0 : index
    %14 = vector.load %arg3[%c0_5, %c0_6] : memref<16x32xf32, #tpu.memory_space<vmem>>, vector<16x32xf32>
    tpu.vector_store %arg3[%c0_5, %c0_6], %13 {strides = array<i32>} : memref<16x32xf32, #tpu.memory_space<vmem>>, vector<16x32xf32>,
    return
  }
  func.func @transform_0(%arg0: i32) -> (i32, i32) {
    %c0_i32 = arith.constant 0 : i32
    %c0_i32_0 = arith.constant 0 : i32
    return %arg0, %c0_i32 : i32, i32
  }
  func.func @transform_1(%arg0: i32) -> (i32, i32) {
    %c0_i32 = arith.constant 0 : i32
    %c0_i32_0 = arith.constant 0 : i32
    %c0_i32_1 = arith.constant 0 : i32
    return %c0_i32, %c0_i32_0 : i32, i32
  }
  func.func @transform_2(%arg0: i32) -> (i32, i32) {
    %c0_i32 = arith.constant 0 : i32
    %c0_i32_0 = arith.constant 0 : i32
    return %arg0, %c0_i32 : i32, i32
  }
}

</mosaic_0001>

<bundles_post_ra>
// kernel: tpu_custom_call.1
= control target key start
LH: loop header
LB: loop body
LE: loop exit
PB: predicated region body
PF: predicated region fallthrough
CT: control target
= control target key end

     0   :  { %7 = vsyncpa [#allocation3], 0  ;;  %s234_s0 = inlined_call_operand.hbm [shape: f32[16,32], index: 0, kind: input, shape index: {}]   ;;  %s235_s1 = inlined_call_operand.hbm [shape: f32[1,32], index: 1, kind: input, shape index: {}]   ;;  %s236_s2 = inlined_call_operand.hbm [shape: f32[16,32], index: 2, kind: output, shape index: {}]  }
   0x1   :  { %8 = vsyncpa [#allocation6], 0 }
   0x2   :  { %9 = vsyncpa [#allocation4], 0  ;;  %s14_s11 = sshll.u32 %s234_s0, 4  ;;  %s195_s12 = smov [#allocation2]   ;;  %s15_s11 = int_to_ptr.hbm [resolvable:$true] %s14_s11 }
   0x3   :  { %s16_s13 = sshll.u32 %s195_s12, 4  ;;  %s28_s16 = sshll.u32 %s235_s1, 4  ;;  %s17_s13 = int_to_ptr.vmem [resolvable:$true] %s16_s13  ;;  %s29_s16 = int_to_ptr.hbm [resolvable:$true] %s28_s16 }
   0x4   :  { %s196_s17 = smov 128   ;;  %s197_s18 = smov 8  }
   0x5   :  { %22 = dma.hbm_to_vmem [thread:$0]  %s15_s11, 256, %s17_s13, [#allocation3], %s196_s17, %s196_s17, %s197_s18  }
   0x6   :  { %s198_s19 = smov [#allocation5]  }
   0x7   :  { %s30_s20 = sshll.u32 %s198_s19, 4  ;;  %s31_s20 = int_to_ptr.vmem [resolvable:$true] %s30_s20 }
   0x8   :  { %33 = dma.hbm_to_vmem [thread:$0]  %s29_s16, 16, %s31_s20, [#allocation6]  }
   0x9   :  { %189 = dma.done.wait [#allocation3], 256  }
   0xa   :  { %190 = vsyncadd [#allocation3], 4294967040 }
   0xb   :  { %191 = dma.done.wait [#allocation6], 16  }
   0xc   :  { %192 = vsyncadd [#allocation6], 4294967280  ;;  %v42_v0 = vld [vmem:[#allocation2] sm:$0xff]  ;;  %vm46_vm0 = vcmask 261120   ;;  %v43_v2 = vld [vmem:[#allocation2 + $0x8] sm:$0xff]  ;;  %s199_s0 = smov [#allocation7]  }
   0xd   :  { %v44_v1 = vmul.f32 %v42_v0, %v42_v0  ;;  %v45_v4 = vmul.f32 %v43_v2, %v43_v2  ;;  %v112_v20 = vld [vmem:[#allocation5] ss:$0 sm:$0xff]  ;;  %s91_s1 = sshll.u32 %s199_s0, 4  ;;  %s93_s23 = sshll.u32 %s236_s2, 4  ;;  %s92_s1 = int_to_ptr.vmem [resolvable:$true] %s91_s1  ;;  %s94_s23 = int_to_ptr.hbm [resolvable:$true] %s93_s23 }
   0xf   :  { %v47_v3 = vsel %vm46_vm0, %v44_v1, 0.0  ;;  %v50_v5 = vsel %vm46_vm0, %v45_v4, 0.0 }
  0x10   :  { %48 = vadd.xlane.f32.xlu0 %v47_v3 }
  0x18   :  { %51 = vadd.xlane.f32.xlu0 %v50_v5 }
  0x83   :  { %v49_v6 = vpop.xlane.xlu0 %48 }
  0x84   :  { %v53_v7 = vmul.f32 0.03125, %v49_v6 }
  0x86   :  { %v55_v8 = vadd.f32 1e-06, %v53_v7 }
  0x88   :  { %113 = vrsqrt.f32 %v55_v8  ;;  %vm63_vm2 = vweird.f32 %v55_v8 }
  0x8b   :  { %v52_v9 = vpop.xlane.xlu0 %51 }
  0x8c   :  { %v54_v10 = vmul.f32 0.03125, %v52_v9 }
  0x8e   :  { %v114_v11 = vpop.eup %113  ;;  %v56_v12 = vadd.f32 1e-06, %v54_v10 }
  0x8f   :  { %v58_v13 = vmul.f32 %v114_v11, %v55_v8  ;;  %vm64_vm1 = vweird.f32 %v114_v11 }
  0x90   :  { %115 = vrsqrt.f32 %v56_v12  ;;  %vm65_vm3 = vmor %vm63_vm2, %vm64_vm1  ;;  %vm73_vm5 = vweird.f32 %v56_v12 }
  0x91   :  { %v59_v14 = vmul.f32 %v114_v11, %v58_v13 }
  0x93   :  { %v60_v15 = vmul.f32 0.5, %v59_v14 }
  0x95   :  { %v61_v16 = vsub.f32 1.5, %v60_v15 }
  0x96   :  { %v116_v17 = vpop.eup %115 }
  0x97   :  { %v62_v18 = vmul.f32 %v114_v11, %v61_v16  ;;  %v68_v19 = vmul.f32 %v116_v17, %v56_v12  ;;  %vm74_vm4 = vweird.f32 %v116_v17 }
  0x98   :  { %vm75_vm6 = vmor %vm73_vm5, %vm74_vm4 }
  0x99   :  { %v66_v21 = vsel %vm65_vm3, %v114_v11, %v62_v18  ;;  %v69_v22 = vmul.f32 %v116_v17, %v68_v19 }
  0x9a   :  { %v77_v23 = vmul.f32 %v66_v21, %v42_v0 }
  0x9b   :  { %v70_v24 = vmul.f32 0.5, %v69_v22 }
  0x9c   :  { %v83_v25 = vmul.f32 %v112_v20, %v77_v23 }
  0x9d   :  { %v71_v26 = vsub.f32 1.5, %v70_v24 }
  0x9e   :  { %85 = vst.msk [vmem:[#allocation7] sm:$0xff] %vm46_vm0, %v83_v25 }
  0x9f   :  { %v72_v27 = vmul.f32 %v116_v17, %v71_v26 }
  0xa1   :  { %v76_v28 = vsel %vm75_vm6, %v116_v17, %v72_v27 }
  0xa2   :  { %v78_v29 = vmul.f32 %v76_v28, %v43_v2 }
  0xa4   :  { %v84_v30 = vmul.f32 %v112_v20, %v78_v29 }
  0xa6   :  { %86 = vst.msk [vmem:[#allocation7 + $0x8] sm:$0xff] %vm46_vm0, %v84_v30 }
  0xa7   :  { %99 = dma.vmem_to_hbm [thread:$0]  %s92_s1, 256, %s94_s23, [#allocation4], %s196_s17, %s196_s17, %s197_s18  }
  0xa8   :  { %193 = dma.done.wait [#allocation4], 256  }
  0xa9   :  { %194 = vsyncadd [#allocation4], 4294967040 }
  0xaa   :  { %104 = vsyncpa [#allocation3], 1 }
  0xab   :  { %105 = vsyncpa [#allocation6], 1 }
  0xac   :  { %106 = vsyncpa [#allocation4], 1 }

</bundles_post_ra>
